<compile_context>
chip_gen: v6e
topology: v6e:2x2x1
jax: 0.10.0
libtpu: 0.0.40
codegen_flags: <defaults>
</compile_context>

<pallas_src>
from functools import partial

import jax
import jax.numpy as jnp
from jax.experimental import pallas as pl
from jax.experimental.pallas import tpu as pltpu


def _policy_kernel(x_ref, w1_ref, b1_ref, w2_ref, b2_ref, out_ref):
    # fc1: Linear(state_dim, 10) + ReLU
    h = jnp.dot(x_ref[...], w1_ref[...], preferred_element_type=jnp.float32)
    h = jnp.maximum(h + b1_ref[...], 0.0)          # b1 is (1, hidden) -> broadcasts

    # out: Linear(10, action_dim)
    logits = jnp.dot(h, w2_ref[...], preferred_element_type=jnp.float32)
    logits = logits + b2_ref[...]                  # b2 is (1, action_dim)

    # Numerically stable softmax over the action axis (exact normalization).
    m = jnp.max(logits, axis=1, keepdims=True)
    e = jnp.exp(logits - m)
    denom = jnp.sum(e, axis=1, keepdims=True)
    out_ref[...] = (e / denom).astype(out_ref.dtype)


def prepare_params(w1, b1, w2, b2):
    """One-time conversion from PyTorch nn.Linear layout to kernel layout.

    w1: [hidden, state_dim], b1: [hidden], w2: [action_dim, hidden], b2: [action_dim]
    -> (w1_t [state_dim, hidden], b1_r [1, hidden],
        w2_t [hidden, action_dim], b2_r [1, action_dim])   all float32.
    """
    return (
        jnp.asarray(w1, jnp.float32).T,
        jnp.asarray(b1, jnp.float32).reshape(1, -1),
        jnp.asarray(w2, jnp.float32).T,
        jnp.asarray(b2, jnp.float32).reshape(1, -1),
    )


@partial(jax.jit, static_argnames=("block_b",))
def policy_forward(x, w1_t, b1_r, w2_t, b2_r, *, block_b=512):
    """x: [B, state_dim] float32; params already prepared via prepare_params()."""
    x = x.astype(jnp.float32)
    B, state_dim = x.shape
    hidden = w1_t.shape[1]
    action_dim = w2_t.shape[1]

    if B <= block_b:
        # Single full-array block (block dims == array dims, always legal).
        bt, grid_b = B, 1
        x_p = x
    else:
        # Batch-tiled: bt is a multiple of 8 (sublane), pad B so the grid divides.
        bt = block_b
        grid_b = pl.cdiv(B, bt)
        pad = grid_b * bt - B
        x_p = jnp.pad(x, ((0, pad), (0, 0))) if pad else x

    b_total = grid_b * bt
    cost = pl.CostEstimate(
        flops=2 * b_total * (state_dim * hidden + hidden * action_dim),
        transcendentals=b_total * action_dim,
        bytes_accessed=4 * (b_total * (state_dim + action_dim)
                            + state_dim * hidden + hidden
                            + hidden * action_dim + action_dim),
    )

    out = pl.pallas_call(
        _policy_kernel,
        out_shape=jax.ShapeDtypeStruct((b_total, action_dim), jnp.float32),
        grid_spec=pltpu.PrefetchScalarGridSpec(
            num_scalar_prefetch=0,
            grid=(grid_b,),
            in_specs=[
                pl.BlockSpec((bt, state_dim), lambda i: (i, 0)),        # x tile
                pl.BlockSpec((state_dim, hidden), lambda i: (0, 0)),    # W1^T (resident)
                pl.BlockSpec((1, hidden), lambda i: (0, 0)),            # b1
                pl.BlockSpec((hidden, action_dim), lambda i: (0, 0)),   # W2^T (resident)
                pl.BlockSpec((1, action_dim), lambda i: (0, 0)),        # b2
            ],
            out_specs=pl.BlockSpec((bt, action_dim), lambda i: (i, 0)),
        ),
        compiler_params=pltpu.CompilerParams(
            dimension_semantics=("parallel",),
            vmem_limit_bytes=32 * 1024 * 1024,
        ),
        cost_estimate=cost,
    )(x_p, w1_t, b1_r, w2_t, b2_r)

    return out[:B] if b_total != B else out


def reference_forward(x, w1, b1, w2, b2):
    h = jnp.maximum(x @ w1.T + b1, 0.0)
    logits = h @ w2.T + b2
    return jax.nn.softmax(logits, axis=1)


if __name__ == "__main__":
    state_dim, action_dim, batch = 8, 4, 2
    hidden = 10

    key = jax.random.PRNGKey(0)
    k_x, k_w1, k_b1, k_w2, k_b2, k_xl = jax.random.split(key, 6)

    # Deterministic parameter init mirroring the module's __init__:
    #   weights ~ Normal(0, 0.1); biases ~ Uniform(-1/sqrt(fan_in), 1/sqrt(fan_in))
    w1 = 0.1 * jax.random.normal(k_w1, (hidden, state_dim), jnp.float32)
    b1 = jax.random.uniform(k_b1, (hidden,), jnp.float32,
                            minval=-1.0 / state_dim ** 0.5,
                            maxval=1.0 / state_dim ** 0.5)
    w2 = 0.1 * jax.random.normal(k_w2, (action_dim, hidden), jnp.float32)
    b2 = jax.random.uniform(k_b2, (action_dim,), jnp.float32,
                            minval=-1.0 / hidden ** 0.5,
                            maxval=1.0 / hidden ** 0.5)

    # One-time parameter preparation (not on the per-call path).
    params = prepare_params(w1, b1, w2, b2)

    # --- Small batch (module-sized) check ---
    x = jax.random.normal(k_x, (batch, state_dim), jnp.float32)
    out = jax.block_until_ready(policy_forward(x, *params))
    ref = reference_forward(x, w1, b1, w2, b2)
    assert out.shape == (batch, action_dim)
    assert jnp.allclose(out, ref, atol=1e-4, rtol=1e-4), "mismatch vs reference (small B)"
    assert jnp.allclose(jnp.sum(out, axis=1), 1.0, atol=1e-4), "softmax rows must sum to 1"

    # --- Larger batch exercises the batch grid + padding path ---
    B_big = 1000
    x_big = jax.random.normal(k_xl, (B_big, state_dim), jnp.float32)
    out_big = jax.block_until_ready(policy_forward(x_big, *params))
    ref_big = reference_forward(x_big, w1, b1, w2, b2)
    assert out_big.shape == (B_big, action_dim)
    assert jnp.allclose(out_big, ref_big, atol=1e-4, rtol=1e-4), "mismatch vs reference (big B)"
    assert jnp.allclose(jnp.sum(out_big, axis=1), 1.0, atol=1e-4), "softmax rows must sum to 1 (big B)"

    print("KERNEL_OK")
</pallas_src>

<mosaic_0001>
module attributes {stable_mosaic.version = 11 : i64} {
  func.func @_policy_kernel(%arg0: i32, %arg1: memref<2x8xf32, #tpu.memory_space<vmem>>, %arg2: memref<8x10xf32, #tpu.memory_space<vmem>>, %arg3: memref<1x10xf32, #tpu.memory_space<vmem>>, %arg4: memref<10x4xf32, #tpu.memory_space<vmem>>, %arg5: memref<1x4xf32, #tpu.memory_space<vmem>>, %arg6: memref<2x4xf32, #tpu.memory_space<vmem>>) attributes {dimension_semantics = [#tpu.dimension_semantics<parallel>], iteration_bounds = array<i64: 1>, scalar_prefetch = 0 : i64, scratch_operands = 0 : i64, tpu.core_type = #tpu.core_type<tc>, window_params = [{transform_indices = @transform_0, window_bounds = array<i64: 2, 8>}, {pipeline_mode = #tpu.pipeline_mode<synchronous>, transform_indices = @transform_1, window_bounds = array<i64: 8, 10>}, {pipeline_mode = #tpu.pipeline_mode<synchronous>, transform_indices = @transform_2, window_bounds = array<i64: 1, 10>}, {pipeline_mode = #tpu.pipeline_mode<synchronous>, transform_indices = @transform_3, window_bounds = array<i64: 10, 4>}, {pipeline_mode = #tpu.pipeline_mode<synchronous>, transform_indices = @transform_4, window_bounds = array<i64: 1, 4>}, {transform_indices = @transform_5, window_bounds = array<i64: 2, 4>}]} {
    %c0 = arith.constant 0 : index
    %c0_0 = arith.constant 0 : index
    %0 = vector.load %arg1[%c0, %c0_0] : memref<2x8xf32, #tpu.memory_space<vmem>>, vector<2x8xf32>
    %c0_1 = arith.constant 0 : index
    %c0_2 = arith.constant 0 : index
    %1 = vector.load %arg2[%c0_1, %c0_2] : memref<8x10xf32, #tpu.memory_space<vmem>>, vector<8x10xf32>
    %cst = arith.constant dense<0.000000e+00> : vector<2x10xf32>
    %2 = tpu.matmul %0, %1, %cst {dimension_numbers = #tpu.dot_dimension_numbers<[1], [0], [0], [1], [0, 0, 1, 1], [], []>} : vector<2x8xf32>, vector<8x10xf32>, vector<2x10xf32> -> vector<2x10xf32>
    %c0_3 = arith.constant 0 : index
    %c0_4 = arith.constant 0 : index
    %3 = vector.load %arg3[%c0_3, %c0_4] : memref<1x10xf32, #tpu.memory_space<vmem>>, vector<1x10xf32>
    %4 = vector.broadcast %3 : vector<1x10xf32> to vector<2x10xf32>
    %5 = arith.addf %2, %4 : vector<2x10xf32>
    %cst_5 = arith.constant 0.000000e+00 : f32
    %6 = vector.broadcast %cst_5 : f32 to vector<2x10xf32>
    %7 = arith.maximumf %5, %6 : vector<2x10xf32>
    %c0_6 = arith.constant 0 : index
    %c0_7 = arith.constant 0 : index
    %8 = vector.load %arg4[%c0_6, %c0_7] : memref<10x4xf32, #tpu.memory_space<vmem>>, vector<10x4xf32>
    %cst_8 = arith.constant dense<0.000000e+00> : vector<2x4xf32>
    %9 = tpu.matmul %7, %8, %cst_8 {dimension_numbers = #tpu.dot_dimension_numbers<[1], [0], [0], [1], [0, 0, 1, 1], [], []>} : vector<2x10xf32>, vector<10x4xf32>, vector<2x4xf32> -> vector<2x4xf32>
    %c0_9 = arith.constant 0 : index
    %c0_10 = arith.constant 0 : index
    %10 = vector.load %arg5[%c0_9, %c0_10] : memref<1x4xf32, #tpu.memory_space<vmem>>, vector<1x4xf32>
    %11 = vector.broadcast %10 : vector<1x4xf32> to vector<2x4xf32>
    %12 = arith.addf %9, %11 : vector<2x4xf32>
    %cst_11 = arith.constant dense<0xFF800000> : vector<2xf32>
    %13 = vector.multi_reduction <maximumf>, %12, %cst_11 [1] : vector<2x4xf32> to vector<2xf32>
    %14 = vector.shape_cast %13 : vector<2xf32> to vector<2x1xf32>
    %15 = vector.broadcast %14 : vector<2x1xf32> to vector<2x4xf32>
    %16 = arith.subf %12, %15 : vector<2x4xf32>
    %17 = math.exp %16 : vector<2x4xf32>
    %cst_12 = arith.constant dense<0.000000e+00> : vector<2xf32>
    %18 = vector.multi_reduction <add>, %17, %cst_12 [1] : vector<2x4xf32> to vector<2xf32>
    %19 = vector.shape_cast %18 : vector<2xf32> to vector<2x1xf32>
    %20 = vector.broadcast %19 : vector<2x1xf32> to vector<2x4xf32>
    %21 = arith.divf %17, %20 : vector<2x4xf32>
    %c0_13 = arith.constant 0 : index
    %c0_14 = arith.constant 0 : index
    %22 = vector.load %arg6[%c0_13, %c0_14] : memref<2x4xf32, #tpu.memory_space<vmem>>, vector<2x4xf32>
    tpu.vector_store %arg6[%c0_13, %c0_14], %21 {strides = array<i32>} : memref<2x4xf32, #tpu.memory_space<vmem>>, vector<2x4xf32>,
    return
  }
  func.func @transform_0(%arg0: i32) -> (i32, i32) {
    %c0_i32 = arith.constant 0 : i32
    %c0_i32_0 = arith.constant 0 : i32
    return %arg0, %c0_i32 : i32, i32
  }
  func.func @transform_1(%arg0: i32) -> (i32, i32) {
    %c0_i32 = arith.constant 0 : i32
    %c0_i32_0 = arith.constant 0 : i32
    %c0_i32_1 = arith.constant 0 : i32
    return %c0_i32, %c0_i32_0 : i32, i32
  }
  func.func @transform_2(%arg0: i32) -> (i32, i32) {
    %c0_i32 = arith.constant 0 : i32
    %c0_i32_0 = arith.constant 0 : i32
    %c0_i32_1 = arith.constant 0 : i32
    return %c0_i32, %c0_i32_0 : i32, i32
  }
  func.func @transform_3(%arg0: i32) -> (i32, i32) {
    %c0_i32 = arith.constant 0 : i32
    %c0_i32_0 = arith.constant 0 : i32
    %c0_i32_1 = arith.constant 0 : i32
    return %c0_i32, %c0_i32_0 : i32, i32
  }
  func.func @transform_4(%arg0: i32) -> (i32, i32) {
    %c0_i32 = arith.constant 0 : i32
    %c0_i32_0 = arith.constant 0 : i32
    %c0_i32_1 = arith.constant 0 : i32
    return %c0_i32, %c0_i32_0 : i32, i32
  }
  func.func @transform_5(%arg0: i32) -> (i32, i32) {
    %c0_i32 = arith.constant 0 : i32
    %c0_i32_0 = arith.constant 0 : i32
    return %arg0, %c0_i32 : i32, i32
  }
}

</mosaic_0001>

<bundles_post_ra>
// kernel: policy_forward.1
= control target key start
LH: loop header
LB: loop body
LE: loop exit
PB: predicated region body
PF: predicated region fallthrough
CT: control target
= control target key end

     0   :  { %vm30_vm0 = vcmask 64512   ;;  %v270_v2 = vmov 0.0   ;;  %vm271_vm1 = vmmov 0   ;;  %s327_s0 = inlined_call_operand.vmem [shape: f32[2,8], index: 0, kind: input, shape index: {}]   ;;  %s328_s1 = inlined_call_operand.vmem [shape: f32[8,10], index: 1, kind: input, shape index: {}]   ;;  %s329_s2 = inlined_call_operand.vmem [shape: f32[1,10], index: 2, kind: input, shape index: {}]   ;;  %s330_s3 = inlined_call_operand.vmem [shape: f32[10,4], index: 3, kind: input, shape index: {}]   ;;  %s331_s4 = inlined_call_operand.vmem [shape: f32[1,4], index: 4, kind: input, shape index: {}]   ;;  %s332_s5 = inlined_call_operand.hbm [shape: f32[2,4], index: 5, kind: output, shape index: {}]  }
   0x1   :  { %v22_v0 = vld [vmem:[%s328_s1] sm:$0xff]  ;;  %229 = vmatprep.subr.mxu0 %v270_v2  ;;  %231 = vmatprep.mubr.msk.f32.mxu0 %vm271_vm1, %v270_v2 }
   0x2   :  { %v21_v1 = vld [vmem:[%s327_s0] sm:$0x3] }
   0x3   :  { %10 = vsyncpa [#allocation3], 0  ;;  %230 = vmatpush3.msra.mxu0 %v22_v0  ;;  %234 = vmatprep.subr.mxu1 %v270_v2  ;;  %v106_v3 = vld [vmem:[%s330_s3 + $0x8] sm:$0x3]  ;;  %vm118_vm2 = vcmask 1041408   ;;  %v105_v4 = vld [vmem:[%s330_s3] sm:$0xff] }
   0x4   :  { %232 = vmatmul.mubr.msk.f32.vlgmr.msra.gmra.mxu0 %vm30_vm0, %v21_v1  ;;  %238 = vmatprep.mubr.msk.f32.mxu1 %vm271_vm1, %v270_v2  ;;  %v219_v5 = vld [vmem:[%s329_s2] ss:$0 sm:$0xff]  ;;  %vm114_vm3 = vcmask 80896   ;;  %vm192_vm4 = vcmask 25600   ;;  %s272_s2 = smov [#allocation2]  }
   0x5   :  { %235 = vmatpush3.msk.msra.mxu1 %vm118_vm2, %v106_v3  ;;  %v221_v10 = vld [vmem:[%s331_s4] ss:$0 sm:$0xff]  ;;  %s211_s3 = sshll.u32 %s272_s2, 4  ;;  %s212_s3 = int_to_ptr.vmem [resolvable:$true] %s211_s3 }
   0x6   :  { %236 = vmatprep.subr.mxu1 %v270_v2  ;;  %s248_s4 = scalar_lea.vmem %s212_s3, 32  ;;  %p253_p1 = scmp.lt.s32.totalorder %s212_s3, %s212_s3 }
   0x7   :  { %237 = vmatpush3.msra.mxu1 %v105_v4  ;;  %p249_p0 = scmp.ne.s32.totalorder %s212_s3, %s248_s4  ;;  %p254_p2 = scmp.lt.s32.totalorder %s248_s4, %s248_s4 }
   0x9   :  { %p255_p3 = por %p254_p2, %p253_p1 }
   0xb   :  { %p256_p4 = pnand %p255_p3, %p249_p0 }
  0xc4   :  { %v100_v6 = vpop.f32.mrf.mxu0 }
  0xc5   :  { %v101_v7 = vadd.f32 %v219_v5, %v100_v6 }
  0xc6   :  { %v233_v8 = vpop.f32.mrf.mxu0 }
  0xc7   :  { %v104_v9 = vmax.f32 %v101_v7, 0.0 }
  0xc9   :  { %239 = vmatmul.mubr.msk.f32.vlgmr.msra.gmra.mxu1 %vm114_vm3, %v104_v9 }
 0x189   :  { %v188_v11 = vpop.f32.mrf.mxu1 }
 0x18a   :  { %v189_v12 = vadd.f32 %v221_v10, %v188_v11 }
 0x18b   :  { %v240_v13 = vpop.f32.mrf.mxu1 }
 0x18c   :  { %v193_v14 = vsel %vm192_vm4, %v189_v12, -inf }
 0x18d   :  { %194 = vmax.xlane.f32.xlu0 %v193_v14 }
 0x216   :  { %v195_v15 = vpop.xlane.xlu0 %194 }
 0x217   :  { %v196_v16 = vsub.f32 %v189_v12, %v195_v15 }
 0x219   :  { %v197_v17 = vmul.f32 1.442695, %v196_v16 }
 0x21b   :  { %244 = vpow2.f32 %v197_v17 }
 0x228   :  { %v245_v18 = vpop.eup %244 }
 0x229   :  { %v199_v19 = vsel %vm192_vm4, %v245_v18, 0.0 }
 0x22a   :  { %200 = vadd.xlane.f32.xlu0 %v199_v19 }
 0x2b3   :  { %v201_v20 = vpop.xlane.xlu0 %200 }
 0x2b4   :  { %246 = vrcp.f32 %v201_v20 }
 0x2c1   :  { %v247_v21 = vpop.eup %246 }
 0x2c2   :  { %v203_v22 = vmul.f32 %v247_v21, %v245_v18 }
 0x2c4   :  { %204 = vst.msk [vmem:[#allocation2] sm:$0x3] %vm192_vm4, %v203_v22 }
 0x2c5   :  { %259 = shalt.err (!%p256_p4)
}
 0x2c6   :  { %214 = dma.vmem_to_hbm [thread:$0]  %s212_s3, 32, %s332_s5, [#allocation3]  }
 0x2c7   :  { %268 = dma.done.wait [#allocation3], 32  }
 0x2c8   :  { %269 = vsyncadd [#allocation3], 4294967264 }
 0x2c9   :  { %218 = vsyncpa [#allocation3], 1 }

</bundles_post_ra>
